<compile_context>
chip_gen: v5e
topology: v5e:2x2
jax: 0.10.0
libtpu: 0.0.40
codegen_flags: <defaults>
</compile_context>

<pallas_src>
import functools

import jax
import jax.numpy as jnp
from jax.experimental import pallas as pl
from jax.experimental.pallas import tpu as pltpu

GAMMA = 1.5
ALPHA = 0.25
LANES = 128
SUBLANES = 8
BLOCK_ROWS_MAX = 4096   # 4096 x 128 f32 = 2 MiB per input block


def _round_up(x, m):
    return (x + m - 1) // m * m


def _focal_loss_kernel(pred_ref, true_ref, out_ref, *, gamma, alpha,
                       total_n, block_rows, tiles_per_core):
    c = pl.program_id(0)          # "parallel" core axis
    i = pl.program_id(1)          # "arbitrary" reduction axis

    @pl.when(i == 0)
    def _():
        out_ref[...] = jnp.zeros_like(out_ref)

    x = pred_ref[...].astype(jnp.float32)
    y = true_ref[...].astype(jnp.float32)

    # Numerically-stable BCE-with-logits (== torch BCEWithLogitsLoss, 'none'):
    #   max(x,0) - x*y + log(1 + exp(-|x|))
    e = jnp.exp(-jnp.abs(x))                      # single shared EUP exp
    d = 1.0 + e
    bce = jnp.maximum(x, 0.0) - x * y + jnp.log(d)

    # sigmoid(x) from the same e; approx EUP reciprocal + 1 Newton refinement.
    inv = pl.reciprocal(d, approx=True)
    inv = inv * (2.0 - d * inv)                   # VPU-only refine to ~f32 exact
    p = jnp.where(x >= 0.0, 1.0, e) * inv

    # t = 1 - p_t = p*(1-y) + y*(1-p) = p + y*(1-2p);  clamp guards sqrt(-eps).
    t = jnp.maximum(p + y * (1.0 - 2.0 * p), 0.0)
    alpha_factor = (1.0 - alpha) + (2.0 * alpha - 1.0) * y

    if gamma == 1.5:
        modulating_factor = t * jnp.sqrt(t)       # t**1.5 without exp/log pow
    elif float(gamma) == int(gamma):
        modulating_factor = t ** int(gamma)
    else:
        modulating_factor = t ** gamma

    loss = bce * alpha_factor * modulating_factor

    # Fold sublanes into a tiny (8,128) resident accumulator (pure VPU adds,
    # layout-aligned to (8,128) vreg tiles; no big accumulator RMW).
    base = (c * tiles_per_core + i) * (block_rows * LANES)
    tile_end = base + block_rows * LANES
    full_tile = tile_end <= total_n

    @pl.when(full_tile)
    def _():
        out_ref[...] += jnp.sum(
            loss.reshape(block_rows // SUBLANES, SUBLANES, LANES), axis=0)

    # Only the tile containing the ragged tail pays for the mask; fully-empty
    # slots (clamped index_map re-reads) accumulate nothing.
    @pl.when(jnp.logical_and(jnp.logical_not(full_tile), base < total_n))
    def _():
        flat_idx = base + (
            jax.lax.broadcasted_iota(jnp.int32, (block_rows, LANES), 0) * LANES
            + jax.lax.broadcasted_iota(jnp.int32, (block_rows, LANES), 1))
        masked = jnp.where(flat_idx < total_n, loss, 0.0)
        out_ref[...] += jnp.sum(
            masked.reshape(block_rows // SUBLANES, SUBLANES, LANES), axis=0)


def focal_loss(pred, true, gamma=GAMMA, alpha=ALPHA):
    """pred, true: same-shape tensors (e.g. NCHW). Returns scalar mean focal loss."""
    assert pred.shape == true.shape
    total_n = pred.size
    assert 0 < total_n < 2**31, "flat-index mask uses int32"

    # Lane-dense slab with no full-tensor astype/pad copies: native dtype,
    # row-major reshape only.  Pad at most (LANES-1) tail elements.
    def to_slab(a):
        flat = a.reshape(-1)
        rem = total_n % LANES
        if rem:
            flat = jnp.pad(flat, (0, LANES - rem))
        return flat.reshape(-1, LANES)

    # TODO(synk): if labels are hard 0/1 masks, pass `true` as bf16 (cast done
    # in-kernel) to cut label HBM read traffic in half; soft targets keep f32.
    pred2d = to_slab(pred)
    true2d = to_slab(true)
    rows = pred2d.shape[0]

    block_rows = min(BLOCK_ROWS_MAX, _round_up(rows, SUBLANES))
    tiles_total = pl.cdiv(rows, block_rows)
    ncores = 2 if tiles_total >= 2 else 1     # serial loop on single-TC chips
    tiles_per_core = pl.cdiv(tiles_total, ncores)

    kernel = functools.partial(
        _focal_loss_kernel, gamma=gamma, alpha=alpha, total_n=total_n,
        block_rows=block_rows, tiles_per_core=tiles_per_core)

    # Clamp so an odd tile count never produces an out-of-bounds block; the
    # duplicated tile's contribution is skipped in-kernel (base >= total_n).
    def in_map(c, i):
        return (jnp.minimum(c * tiles_per_core + i, tiles_total - 1), 0)

    bytes_in = (jnp.dtype(pred.dtype).itemsize
                + jnp.dtype(true.dtype).itemsize) * total_n
    partial_sums = pl.pallas_call(
        kernel,
        out_shape=jax.ShapeDtypeStruct((ncores, SUBLANES, LANES), jnp.float32),
        grid_spec=pltpu.PrefetchScalarGridSpec(
            num_scalar_prefetch=0,
            grid=(ncores, tiles_per_core),
            in_specs=[
                pl.BlockSpec((block_rows, LANES), in_map),
                pl.BlockSpec((block_rows, LANES), in_map),
            ],
            # First dim squeezed: each core owns one resident (8,128)
            # accumulator block, constant along the reduction axis.
            out_specs=pl.BlockSpec((None, SUBLANES, LANES),
                                   lambda c, i: (c, 0, 0)),
        ),
        compiler_params=pltpu.CompilerParams(
            dimension_semantics=("parallel", "arbitrary"),
            vmem_limit_bytes=32 * 1024 * 1024),
        cost_estimate=pl.CostEstimate(
            flops=18 * total_n,
            transcendentals=4 * total_n,
            bytes_accessed=bytes_in + 4 * ncores * SUBLANES * LANES),
    )(pred2d, true2d)

    # reduction == 'mean'  (divide by the true element count, not the padded one)
    return jnp.sum(partial_sums) / jnp.float32(total_n)


def focal_loss_ref(pred, true, gamma=GAMMA, alpha=ALPHA):
    x = pred.astype(jnp.float32)
    y = true.astype(jnp.float32)
    bce = jnp.maximum(x, 0.0) - x * y + jnp.log1p(jnp.exp(-jnp.abs(x)))
    p = jax.nn.sigmoid(x)
    p_t = y * p + (1 - y) * (1 - p)
    af = y * alpha + (1 - y) * (1 - alpha)
    mf = (1.0 - p_t) ** gamma
    return jnp.mean(bce * af * mf)


if __name__ == "__main__":
    key = jax.random.PRNGKey(0)
    k1, k2 = jax.random.split(key)
    # NCHW: batch=2, channels=4, spatial=16x16  -> 2048 elements
    pred = jax.random.normal(k1, (2, 4, 16, 16), dtype=jnp.float32)
    true = (jax.random.uniform(k2, (2, 4, 16, 16)) > 0.5).astype(jnp.float32)

    out = focal_loss(pred, true)
    out = jax.block_until_ready(out)

    ref = focal_loss_ref(pred, true)
    assert jnp.allclose(out, ref, rtol=1e-4, atol=1e-6), (out, ref)
    print("KERNEL_OK")
</pallas_src>

<mosaic_0001>
module attributes {stable_mosaic.version = 11 : i64} {
  func.func @_focal_loss_kernel(%arg0: i32, %arg1: i32, %arg2: memref<16x128xf32, #tpu.memory_space<vmem>>, %arg3: memref<16x128xf32, #tpu.memory_space<vmem>>, %arg4: memref<1x8x128xf32, #tpu.memory_space<vmem>>) attributes {dimension_semantics = [#tpu.dimension_semantics<parallel>, #tpu.dimension_semantics<arbitrary>], iteration_bounds = array<i64: 1, 1>, scalar_prefetch = 0 : i64, scratch_operands = 0 : i64, tpu.core_type = #tpu.core_type<tc>, window_params = [{transform_indices = @transform_0, window_bounds = array<i64: 16, 128>}, {transform_indices = @transform_1, window_bounds = array<i64: 16, 128>}, {transform_indices = @transform_2, window_bounds = array<i64: 1, 8, 128>}]} {
    %c0_i32 = arith.constant 0 : i32
    %0 = arith.cmpi eq, %arg1, %c0_i32 : i32
    %1 = arith.extui %0 : i1 to i32
    %c0_i32_0 = arith.constant 0 : i32
    %2 = arith.cmpi ne, %1, %c0_i32_0 : i32
    scf.if %2 {
      %cst_19 = arith.constant 0.000000e+00 : f32
      %55 = vector.broadcast %cst_19 : f32 to vector<8x128xf32>
      %c0_20 = arith.constant 0 : index
      %c0_21 = arith.constant 0 : index
      %c0_22 = arith.constant 0 : index
      %56 = vector.load %arg4[%c0_20, %c0_21, %c0_22] : memref<1x8x128xf32, #tpu.memory_space<vmem>>, vector<1x8x128xf32>
      %57 = vector.shape_cast %56 : vector<1x8x128xf32> to vector<8x128xf32>
      %58 = vector.shape_cast %55 : vector<8x128xf32> to vector<1x8x128xf32>
      tpu.vector_store %arg4[%c0_20, %c0_21, %c0_22], %58 {strides = array<i32>} : memref<1x8x128xf32, #tpu.memory_space<vmem>>, vector<1x8x128xf32>,
    } else {
    }
    %c0 = arith.constant 0 : index
    %c0_1 = arith.constant 0 : index
    %3 = vector.load %arg2[%c0, %c0_1] : memref<16x128xf32, #tpu.memory_space<vmem>>, vector<16x128xf32>
    %c0_2 = arith.constant 0 : index
    %c0_3 = arith.constant 0 : index
    %4 = vector.load %arg3[%c0_2, %c0_3] : memref<16x128xf32, #tpu.memory_space<vmem>>, vector<16x128xf32>
    %5 = math.absf %3 : vector<16x128xf32>
    %cst = arith.constant 0.000000e+00 : f32
    %6 = vector.broadcast %cst : f32 to vector<16x128xf32>
    %7 = arith.subf %6, %5 : vector<16x128xf32>
    %8 = math.exp %7 : vector<16x128xf32>
    %cst_4 = arith.constant 1.000000e+00 : f32
    %9 = vector.broadcast %cst_4 : f32 to vector<16x128xf32>
    %10 = arith.addf %9, %8 : vector<16x128xf32>
    %cst_5 = arith.constant 0.000000e+00 : f32
    %11 = vector.broadcast %cst_5 : f32 to vector<16x128xf32>
    %12 = arith.maximumf %3, %11 : vector<16x128xf32>
    %13 = arith.mulf %3, %4 : vector<16x128xf32>
    %14 = arith.subf %12, %13 : vector<16x128xf32>
    %15 = math.log %10 : vector<16x128xf32>
    %16 = arith.addf %14, %15 : vector<16x128xf32>
    %17 = tpu.reciprocal %10 {approx = true} : vector<16x128xf32> -> vector<16x128xf32>
    %18 = arith.mulf %10, %17 : vector<16x128xf32>
    %cst_6 = arith.constant 2.000000e+00 : f32
    %19 = vector.broadcast %cst_6 : f32 to vector<16x128xf32>
    %20 = arith.subf %19, %18 : vector<16x128xf32>
    %21 = arith.mulf %17, %20 : vector<16x128xf32>
    %cst_7 = arith.constant 0.000000e+00 : f32
    %22 = vector.broadcast %cst_7 : f32 to vector<16x128xf32>
    %23 = arith.cmpf oge, %3, %22 : vector<16x128xf32>
    %cst_8 = arith.constant 1.000000e+00 : f32
    %24 = vector.broadcast %cst_8 : f32 to vector<16x128xf32>
    %25 = arith.select %23, %24, %8 : vector<16x128xi1>, vector<16x128xf32>
    %26 = arith.mulf %25, %21 : vector<16x128xf32>
    %cst_9 = arith.constant 2.000000e+00 : f32
    %27 = vector.broadcast %cst_9 : f32 to vector<16x128xf32>
    %28 = arith.mulf %27, %26 : vector<16x128xf32>
    %cst_10 = arith.constant 1.000000e+00 : f32
    %29 = vector.broadcast %cst_10 : f32 to vector<16x128xf32>
    %30 = arith.subf %29, %28 : vector<16x128xf32>
    %31 = arith.mulf %4, %30 : vector<16x128xf32>
    %32 = arith.addf %26, %31 : vector<16x128xf32>
    %cst_11 = arith.constant 0.000000e+00 : f32
    %33 = vector.broadcast %cst_11 : f32 to vector<16x128xf32>
    %34 = arith.maximumf %32, %33 : vector<16x128xf32>
    %cst_12 = arith.constant -5.000000e-01 : f32
    %35 = vector.broadcast %cst_12 : f32 to vector<16x128xf32>
    %36 = arith.mulf %35, %4 : vector<16x128xf32>
    %cst_13 = arith.constant 7.500000e-01 : f32
    %37 = vector.broadcast %cst_13 : f32 to vector<16x128xf32>
    %38 = arith.addf %37, %36 : vector<16x128xf32>
    %39 = math.sqrt %34 : vector<16x128xf32>
    %40 = arith.mulf %34, %39 : vector<16x128xf32>
    %41 = arith.mulf %16, %38 : vector<16x128xf32>
    %42 = arith.mulf %41, %40 : vector<16x128xf32>
    %c1_i32 = arith.constant 1 : i32
    %43 = arith.muli %arg0, %c1_i32 : i32
    %44 = arith.addi %43, %arg1 : i32
    %c2048_i32 = arith.constant 2048 : i32
    %45 = arith.muli %44, %c2048_i32 : i32
    %c2048_i32_14 = arith.constant 2048 : i32
    %46 = arith.addi %45, %c2048_i32_14 : i32
    %c2048_i32_15 = arith.constant 2048 : i32
    %47 = arith.cmpi sle, %46, %c2048_i32_15 : i32
    %48 = arith.extui %47 : i1 to i32
    %c0_i32_16 = arith.constant 0 : i32
    %49 = arith.cmpi ne, %48, %c0_i32_16 : i32
    scf.if %49 {
      %c0_19 = arith.constant 0 : index
      %c0_20 = arith.constant 0 : index
      %c0_21 = arith.constant 0 : index
      %55 = vector.load %arg4[%c0_19, %c0_20, %c0_21] : memref<1x8x128xf32, #tpu.memory_space<vmem>>, vector<1x8x128xf32>
      %56 = vector.shape_cast %55 : vector<1x8x128xf32> to vector<8x128xf32>
      %57 = vector.shape_cast %42 : vector<16x128xf32> to vector<2x8x128xf32>
      %cst_22 = arith.constant dense<0.000000e+00> : vector<8x128xf32>
      %58 = vector.multi_reduction <add>, %57, %cst_22 [0] : vector<2x8x128xf32> to vector<8x128xf32>
      %59 = arith.addf %56, %58 : vector<8x128xf32>
      %c0_23 = arith.constant 0 : index
      %c0_24 = arith.constant 0 : index
      %c0_25 = arith.constant 0 : index
      %60 = vector.load %arg4[%c0_23, %c0_24, %c0_25] : memref<1x8x128xf32, #tpu.memory_space<vmem>>, vector<1x8x128xf32>
      %61 = vector.shape_cast %60 : vector<1x8x128xf32> to vector<8x128xf32>
      %62 = vector.shape_cast %59 : vector<8x128xf32> to vector<1x8x128xf32>
      tpu.vector_store %arg4[%c0_23, %c0_24, %c0_25], %62 {strides = array<i32>} : memref<1x8x128xf32, #tpu.memory_space<vmem>>, vector<1x8x128xf32>,
    } else {
    }
    %true = arith.constant true
    %50 = arith.xori %47, %true : i1
    %c2048_i32_17 = arith.constant 2048 : i32
    %51 = arith.cmpi slt, %45, %c2048_i32_17 : i32
    %52 = arith.andi %50, %51 : i1
    %53 = arith.extui %52 : i1 to i32
    %c0_i32_18 = arith.constant 0 : i32
    %54 = arith.cmpi ne, %53, %c0_i32_18 : i32
    scf.if %54 {
      %55 = tpu.iota {dimensions = array<i32: 0>} : vector<16x128xi32>
      %c128_i32 = arith.constant 128 : i32
      %56 = vector.broadcast %c128_i32 : i32 to vector<16x128xi32>
      %57 = arith.muli %55, %56 : vector<16x128xi32>
      %58 = tpu.iota {dimensions = array<i32: 1>} : vector<16x128xi32>
      %59 = arith.addi %57, %58 : vector<16x128xi32>
      %60 = vector.broadcast %45 : i32 to vector<16x128xi32>
      %61 = arith.addi %60, %59 : vector<16x128xi32>
      %c2048_i32_19 = arith.constant 2048 : i32
      %62 = vector.broadcast %c2048_i32_19 : i32 to vector<16x128xi32>
      %63 = arith.cmpi slt, %61, %62 : vector<16x128xi32>
      %cst_20 = arith.constant 0.000000e+00 : f32
      %64 = vector.broadcast %cst_20 : f32 to vector<16x128xf32>
      %65 = arith.select %63, %42, %64 : vector<16x128xi1>, vector<16x128xf32>
      %c0_21 = arith.constant 0 : index
      %c0_22 = arith.constant 0 : index
      %c0_23 = arith.constant 0 : index
      %66 = vector.load %arg4[%c0_21, %c0_22, %c0_23] : memref<1x8x128xf32, #tpu.memory_space<vmem>>, vector<1x8x128xf32>
      %67 = vector.shape_cast %66 : vector<1x8x128xf32> to vector<8x128xf32>
      %68 = vector.shape_cast %65 : vector<16x128xf32> to vector<2x8x128xf32>
      %cst_24 = arith.constant dense<0.000000e+00> : vector<8x128xf32>
      %69 = vector.multi_reduction <add>, %68, %cst_24 [0] : vector<2x8x128xf32> to vector<8x128xf32>
      %70 = arith.addf %67, %69 : vector<8x128xf32>
      %c0_25 = arith.constant 0 : index
      %c0_26 = arith.constant 0 : index
      %c0_27 = arith.constant 0 : index
      %71 = vector.load %arg4[%c0_25, %c0_26, %c0_27] : memref<1x8x128xf32, #tpu.memory_space<vmem>>, vector<1x8x128xf32>
      %72 = vector.shape_cast %71 : vector<1x8x128xf32> to vector<8x128xf32>
      %73 = vector.shape_cast %70 : vector<8x128xf32> to vector<1x8x128xf32>
      tpu.vector_store %arg4[%c0_25, %c0_26, %c0_27], %73 {strides = array<i32>} : memref<1x8x128xf32, #tpu.memory_space<vmem>>, vector<1x8x128xf32>,
    } else {
    }
    return
  }
  func.func @transform_0(%arg0: i32, %arg1: i32) -> (i32, i32) {
    %c1_i32 = arith.constant 1 : i32
    %0 = arith.muli %arg0, %c1_i32 : i32
    %1 = arith.addi %0, %arg1 : i32
    %c0_i32 = arith.constant 0 : i32
    %2 = arith.minsi %1, %c0_i32 : i32
    %c0_i32_0 = arith.constant 0 : i32
    %c0_i32_1 = arith.constant 0 : i32
    return %2, %c0_i32_0 : i32, i32
  }
  func.func @transform_1(%arg0: i32, %arg1: i32) -> (i32, i32) {
    %c1_i32 = arith.constant 1 : i32
    %0 = arith.muli %arg0, %c1_i32 : i32
    %1 = arith.addi %0, %arg1 : i32
    %c0_i32 = arith.constant 0 : i32
    %2 = arith.minsi %1, %c0_i32 : i32
    %c0_i32_0 = arith.constant 0 : i32
    %c0_i32_1 = arith.constant 0 : i32
    return %2, %c0_i32_0 : i32, i32
  }
  func.func @transform_2(%arg0: i32, %arg1: i32) -> (i32, i32, i32) {
    %c0_i32 = arith.constant 0 : i32
    %c0_i32_0 = arith.constant 0 : i32
    %c0_i32_1 = arith.constant 0 : i32
    return %arg0, %c0_i32, %c0_i32_0 : i32, i32, i32
  }
}

</mosaic_0001>

<bundles_post_ra>
// kernel: tpu_custom_call.1
= control target key start
LH: loop header
LB: loop body
LE: loop exit
PB: predicated region body
PF: predicated region fallthrough
CT: control target
= control target key end

     0   :  { %7 = vsyncpa [#allocation3], 0  ;;  %s347_s0 = inlined_call_operand.hbm [shape: f32[16,128], index: 0, kind: input, shape index: {}]   ;;  %s348_s1 = inlined_call_operand.hbm [shape: f32[16,128], index: 1, kind: input, shape index: {}]   ;;  %s349_s2 = inlined_call_operand.hbm [shape: f32[1,8,128], index: 2, kind: output, shape index: {}]  }
   0x1   :  { %8 = vsyncpa [#allocation6], 0 }
   0x2   :  { %9 = vsyncpa [#allocation4], 0  ;;  %s20_s11 = sshll.u32 %s347_s0, 4  ;;  %s312_s12 = smov [#allocation2]   ;;  %s21_s11 = int_to_ptr.hbm [resolvable:$true] %s20_s11 }
   0x3   :  { %s22_s13 = sshll.u32 %s312_s12, 4  ;;  %s39_s16 = sshll.u32 %s348_s1, 4  ;;  %s23_s13 = int_to_ptr.vmem [resolvable:$true] %s22_s13  ;;  %s40_s16 = int_to_ptr.hbm [resolvable:$true] %s39_s16 }
   0x4   :  { %s313_s17 = smov 128   ;;  %s314_s18 = smov 8  }
   0x5   :  { %28 = dma.hbm_to_vmem [thread:$0]  %s21_s11, 256, %s23_s13, [#allocation3], %s313_s17, %s313_s17, %s314_s18  }
   0x6   :  { %s315_s19 = smov [#allocation5]  }
   0x7   :  { %s41_s20 = sshll.u32 %s315_s19, 4  ;;  %s42_s20 = int_to_ptr.vmem [resolvable:$true] %s41_s20 }
   0x8   :  { %47 = dma.hbm_to_vmem [thread:$0]  %s40_s16, 256, %s42_s20, [#allocation6], %s313_s17, %s313_s17, %s314_s18  }
   0x9   :  { %306 = dma.done.wait [#allocation3], 256  }
   0xa   :  { %307 = vsyncadd [#allocation3], 4294967040 }
   0xb   :  { %308 = dma.done.wait [#allocation6], 256  }
   0xc   :  { %309 = vsyncadd [#allocation6], 4294967040  ;;  %v69_v0 = vld [vmem:[#allocation2] sm:$0xff]  ;;  %v338_v1 = vld [vmem:[#allocation2 + $0x8] sm:$0xff]  ;;  %s316_s0 = smov [#allocation7]   ;;  %s197_s23 = sshll.u32 %s349_s2, 4  ;;  %s198_s23 = int_to_ptr.hbm [resolvable:$true] %s197_s23 }
   0xd   :  { %v73_v2 = vand.u32 2147483647, %v69_v0  ;;  %v74_v3 = vand.u32 2147483647, %v338_v1  ;;  %vm103_vm0 = vcmp.ge.f32.partialorder %v69_v0, 0.0  ;;  %vm104_vm1 = vcmp.ge.f32.partialorder %v338_v1, 0.0 }
   0xe   :  { %v71_v25 = vld [vmem:[#allocation5] sm:$0xff]  ;;  %v72_v27 = vld [vmem:[#allocation5 + $0x8] sm:$0xff]  ;;  %v83_v37 = vmax.f32 %v69_v0, 0.0  ;;  %v84_v42 = vmax.f32 %v338_v1, 0.0  ;;  %s195_s1 = sshll.u32 %s316_s0, 4  ;;  %s196_s1 = int_to_ptr.vmem [resolvable:$true] %s195_s1 }
   0xf   :  { %v75_v4 = vsub.f32 0.0, %v73_v2  ;;  %v76_v5 = vsub.f32 0.0, %v74_v3  ;;  %v85_v38 = vmul.f32 %v71_v25, %v69_v0  ;;  %v86_v43 = vmul.f32 %v72_v27, %v338_v1 }
  0x10   :  { %v119_v50 = vmul.f32 -0.5, %v71_v25  ;;  %v120_v51 = vmul.f32 -0.5, %v72_v27 }
  0x11   :  { %v77_v6 = vmul.f32 1.442695, %v75_v4  ;;  %v79_v7 = vmul.f32 1.442695, %v76_v5  ;;  %v87_v47 = vsub.f32 %v83_v37, %v85_v38  ;;  %v88_v53 = vsub.f32 %v84_v42, %v86_v43 }
  0x12   :  { %v121_v59 = vadd.f32 0.75, %v119_v50  ;;  %v122_v60 = vadd.f32 0.75, %v120_v51 }
  0x13   :  { %218 = vpow2.f32 %v77_v6 }
  0x14   :  { %220 = vpow2.f32 %v79_v7 }
  0x19   :  { %v219_v8 = vpop.eup %218 }
  0x1a   :  { %v221_v9 = vpop.eup %220  ;;  %v81_v10 = vadd.f32 1.0, %v219_v8  ;;  %v105_v18 = vsel %vm103_vm0, 1.0, %v219_v8 }
  0x1b   :  { %v82_v11 = vadd.f32 1.0, %v221_v9  ;;  %v106_v20 = vsel %vm104_vm1, 1.0, %v221_v9 }
  0x1c   :  { %222 = vrcp.f32 %v81_v10 }
  0x1d   :  { %224 = vrcp.f32 %v82_v11 }
  0x22   :  { %v223_v12 = vpop.eup %222 }
  0x23   :  { %v225_v13 = vpop.eup %224  ;;  %v97_v14 = vmul.f32 %v223_v12, %v81_v10 }
  0x24   :  { %v98_v15 = vmul.f32 %v225_v13, %v82_v11 }
  0x25   :  { %v99_v16 = vsub.f32 2.0, %v97_v14 }
  0x26   :  { %v100_v17 = vsub.f32 2.0, %v98_v15 }
  0x27   :  { %v101_v19 = vmul.f32 %v223_v12, %v99_v16 }
  0x28   :  { %v102_v21 = vmul.f32 %v225_v13, %v100_v17 }
  0x29   :  { %v107_v22 = vmul.f32 %v105_v18, %v101_v19 }
  0x2a   :  { %v108_v23 = vmul.f32 %v106_v20, %v102_v21 }
  0x2b   :  { %v109_v24 = vmul.f32 2.0, %v107_v22 }
  0x2c   :  { %v110_v26 = vmul.f32 2.0, %v108_v23 }
  0x2d   :  { %v111_v28 = vsub.f32 1.0, %v109_v24 }
  0x2e   :  { %v112_v29 = vsub.f32 1.0, %v110_v26 }
  0x2f   :  { %v113_v30 = vmul.f32 %v111_v28, %v71_v25 }
  0x30   :  { %v114_v31 = vmul.f32 %v112_v29, %v72_v27 }
  0x31   :  { %v115_v32 = vadd.f32 %v113_v30, %v107_v22 }
  0x32   :  { %v116_v33 = vadd.f32 %v114_v31, %v108_v23 }
  0x33   :  { %v117_v34 = vmax.f32 %v115_v32, 0.0 }
  0x34   :  { %v118_v35 = vmax.f32 %v116_v33, 0.0 }
  0x35   :  { %226 = vrsqrt.f32 %v117_v34  ;;  %vm130_vm2 = vcmp.eq.f32.partialorder %v117_v34, inf  ;;  %v133_v63 = vand.u32 2147483648, %v117_v34  ;;  %vm132_vm3 = vcmp.eq.f32.partialorder %v117_v34, 0.0 }
  0x36   :  { %228 = vrsqrt.f32 %v118_v35  ;;  %vm142_vm4 = vcmp.eq.f32.partialorder %v118_v35, inf  ;;  %v145_v2 = vand.u32 2147483648, %v118_v35  ;;  %vm144_vm5 = vcmp.eq.f32.partialorder %v118_v35, 0.0 }
  0x37   :  { %230 = vlog2.f32 %v81_v10 }
  0x38   :  { %232 = vlog2.f32 %v82_v11 }
  0x3b   :  { %v227_v36 = vpop.eup %226 }
  0x3c   :  { %v229_v39 = vpop.eup %228  ;;  %v124_v40 = vmul.f32 %v227_v36, %v117_v34 }
  0x3d   :  { %v231_v41 = vpop.eup %230  ;;  %v136_v44 = vmul.f32 %v229_v39, %v118_v35 }
  0x3e   :  { %v233_v45 = vpop.eup %232  ;;  %v125_v46 = vmul.f32 %v227_v36, %v124_v40  ;;  %v90_v49 = vmul.f32 0.6931472, %v231_v41 }
  0x3f   :  { %v137_v48 = vmul.f32 %v229_v39, %v136_v44  ;;  %v92_v54 = vmul.f32 0.6931472, %v233_v45 }
  0x40   :  { %v126_v52 = vmul.f32 0.5, %v125_v46  ;;  %v93_v58 = vadd.f32 %v90_v49, %v87_v47 }
  0x41   :  { %v138_v55 = vmul.f32 0.5, %v137_v48  ;;  %v94_v62 = vadd.f32 %v92_v54, %v88_v53 }
  0x42   :  { %v127_v56 = vsub.f32 1.5, %v126_v52  ;;  %v149_v5 = vmul.f32 %v121_v59, %v93_v58 }
  0x43   :  { %v139_v57 = vsub.f32 1.5, %v138_v55  ;;  %v150_v8 = vmul.f32 %v122_v60, %v94_v62 }
  0x44   :  { %v128_v61 = vmul.f32 %v227_v36, %v127_v56 }
  0x45   :  { %v140_v0 = vmul.f32 %v229_v39, %v139_v57 }
  0x46   :  { %v129_v1 = vmul.f32 %v128_v61, %v117_v34 }
  0x47   :  { %v141_v3 = vmul.f32 %v140_v0, %v118_v35 }
  0x48   :  { %v131_v4 = vsel %vm130_vm2, %v117_v34, %v129_v1 }
  0x49   :  { %v134_v6 = vsel %vm132_vm3, %v133_v63, %v131_v4  ;;  %v143_v7 = vsel %vm142_vm4, %v118_v35, %v141_v3 }
  0x4a   :  { %v146_v9 = vsel %vm144_vm5, %v145_v2, %v143_v7  ;;  %v147_v10 = vmul.f32 %v134_v6, %v117_v34 }
  0x4b   :  { %v148_v11 = vmul.f32 %v146_v9, %v118_v35 }
  0x4c   :  { %v151_v12 = vmul.f32 %v149_v5, %v147_v10 }
  0x4d   :  { %v152_v13 = vmul.f32 %v150_v8, %v148_v11 }
  0x4f   :  { %v161_v14 = vadd.f32 %v152_v13, %v151_v12 }
  0x51   :  { %163 = vst [vmem:[#allocation7] sm:$0xff] %v161_v14 }
  0x52   :  { %200 = dma.vmem_to_hbm [thread:$0]  %s196_s1, 128, %s198_s23, [#allocation4]  }
  0x53   :  { %310 = dma.done.wait [#allocation4], 128  }
  0x54   :  { %311 = vsyncadd [#allocation4], 4294967168 }
  0x55   :  { %205 = vsyncpa [#allocation3], 1 }
  0x56   :  { %206 = vsyncpa [#allocation6], 1 }
  0x57   :  { %207 = vsyncpa [#allocation4], 1 }

</bundles_post_ra>
